<compile_context>
chip_gen: v6e
topology: v6e:2x2x1
jax: 0.10.0
libtpu: 0.0.40
codegen_flags: <defaults>
</compile_context>

<pallas_src>
import numpy as np
import jax
import jax.numpy as jnp
from jax.experimental import pallas as pl
from jax.experimental.pallas import tpu as pltpu


def fft_l1_kernel(x_ref, t_ref, chb_ref, shb_ref, fwt_ref, fwb_ref, out_ref, acc_ref):
    i = pl.program_id(1)

    @pl.when(i == 0)
    def _():
        acc_ref[...] = jnp.zeros_like(acc_ref)

    # FFT linearity: FFT(x) - FFT(t) == FFT(x - t).  Diff in f32 (VPU), cast to
    # bf16 for the MXU (f32 accumulation via preferred_element_type).
    d = (x_ref[...] - t_ref[...]).astype(jnp.bfloat16)                      # (M, W)

    # H stage (per-slab column DFT via block-diagonal constants), no reshuffle:
    p = jnp.dot(chb_ref[...], d, preferred_element_type=jnp.float32)        # (M, W)
    q = jnp.dot(shb_ref[...], d, preferred_element_type=jnp.float32)        # (M, W)

    # W stage with signs baked into the constants so the result is [Re | Im]
    # directly (no concat / roll / lane slicing in the kernel):
    ri = (jnp.dot(p.astype(jnp.bfloat16), fwt_ref[...],
                  preferred_element_type=jnp.float32)
          + jnp.dot(q.astype(jnp.bfloat16), fwb_ref[...],
                    preferred_element_type=jnp.float32))                     # (M, 2W)

    # Single fused reduction: sum(|Re|) + sum(|Im|) over the whole block.
    acc_ref[...] += jnp.sum(jnp.abs(ri))

    @pl.when(i == pl.num_programs(1) - 1)
    def _():
        out_ref[...] = acc_ref[...]


def _dft_consts(H, W, tb):
    """Constant DFT matrices (bf16):
       CHb = I_tb (x) cos(-2*pi*jk/H), SHb = I_tb (x) sin(-2*pi*jk/H)   (M, M)
       FWt = [Cw | Sw],  FWb = [-Sw | Cw]                               (W, 2W)"""
    jh = np.arange(H)
    ah = -2.0 * np.pi * np.outer(jh, jh) / H
    ch, sh = np.cos(ah), np.sin(ah)
    jw = np.arange(W)
    aw = -2.0 * np.pi * np.outer(jw, jw) / W
    cw, sw = np.cos(aw), np.sin(aw)

    eye = np.eye(tb)
    chb = np.kron(eye, ch)                          # (tb*H, tb*H)
    shb = np.kron(eye, sh)
    fwt = np.concatenate([cw, sw], axis=1)          # (W, 2W)
    fwb = np.concatenate([-sw, cw], axis=1)         # (W, 2W)

    def to_bf16(a):
        return jnp.asarray(a, dtype=jnp.bfloat16)

    return to_bf16(chb), to_bf16(shb), to_bf16(fwt), to_bf16(fwb)


def _pick_tb(BC, H):
    """Largest divisor of BC such that the block-diagonal H matrices stay
    <= 256x256 and the (tb*H, W) block keeps an 8-aligned sublane dimension
    (or covers the full array)."""
    cap = max(1, 256 // H)
    tb = 1
    for cand in range(1, min(BC, cap) + 1):
        if BC % cand == 0 and ((cand * H) % 8 == 0 or cand == BC):
            tb = cand
    return tb


def fft_l1_loss(x, t, *, tb=None):
    """Pallas equivalent of:
       F.l1_loss(torch.rfft(x, 2, onesided=False), torch.rfft(t, 2, onesided=False))
    """
    B, C, H, W = x.shape
    BC = B * C
    xr = x.astype(jnp.float32).reshape(BC * H, W)
    tr = t.astype(jnp.float32).reshape(BC * H, W)

    if tb is None:
        tb = _pick_tb(BC, H)
    assert BC % tb == 0, "tb must divide B*C"
    blocks = BC // tb
    nc = 2 if blocks % 2 == 0 else 1        # megacore split (v7x); no-op on 1-TC chips
    inner = blocks // nc

    chb, shb, fwt, fwb = _dft_consts(H, W, tb)
    M = tb * H

    def x_map(p, i):
        return (p * inner + i, 0)

    def const_map(p, i):
        return (0, 0)

    partials = pl.pallas_call(
        fft_l1_kernel,
        out_shape=jax.ShapeDtypeStruct((nc, 1, 1), jnp.float32),
        grid_spec=pltpu.PrefetchScalarGridSpec(
            num_scalar_prefetch=0,
            grid=(nc, inner),
            in_specs=[
                pl.BlockSpec((M, W), x_map),              # x slabs (tb stacked rows)
                pl.BlockSpec((M, W), x_map),              # t slabs
                pl.BlockSpec((M, M), const_map),          # I (x) C_H, resident
                pl.BlockSpec((M, M), const_map),          # I (x) S_H, resident
                pl.BlockSpec((W, 2 * W), const_map),      # [Cw | Sw], resident
                pl.BlockSpec((W, 2 * W), const_map),      # [-Sw | Cw], resident
            ],
            out_specs=pl.BlockSpec((1, 1, 1), lambda p, i: (p, 0, 0)),
            scratch_shapes=[pltpu.VMEM((1, 1, 1), jnp.float32)],
        ),
        compiler_params=pltpu.CompilerParams(
            dimension_semantics=("parallel", "arbitrary")),
    )(xr, tr, chb, shb, fwt, fwb)

    denom = jnp.float32(BC * H * W * 2)     # real+imag channels, mean reduction
    return jnp.sum(partials) / denom


if __name__ == "__main__":
    key = jax.random.PRNGKey(0)
    k1, k2 = jax.random.split(key)
    B, C, H, W = 2, 4, 16, 16
    x = jax.random.normal(k1, (B, C, H, W), dtype=jnp.float32)
    t = jax.random.normal(k2, (B, C, H, W), dtype=jnp.float32)

    # Auto tb (single large block) and a small tb that exercises the parallel
    # grid axis plus the multi-step resident accumulator.
    loss_auto = jax.block_until_ready(fft_l1_loss(x, t))
    loss_tb2 = jax.block_until_ready(fft_l1_loss(x, t, tb=2))

    # Reference (plain JAX FFT, f32) for correctness check.
    f1 = jnp.fft.fft2(x.astype(jnp.float32), axes=(-2, -1))
    f2 = jnp.fft.fft2(t.astype(jnp.float32), axes=(-2, -1))
    dd = f1 - f2
    ref = (jnp.sum(jnp.abs(dd.real)) + jnp.sum(jnp.abs(dd.imag))) / (B * C * H * W * 2)
    ref = float(jax.block_until_ready(ref))

    for name, val in (("auto", loss_auto), ("tb2", loss_tb2)):
        if not np.isclose(float(val), ref, rtol=2e-2, atol=1e-3):
            raise AssertionError(f"mismatch ({name}): pallas={float(val)}, ref={ref}")
    print("KERNEL_OK")
</pallas_src>

<mosaic_0001>
module attributes {stable_mosaic.version = 11 : i64} {
  func.func @fft_l1_kernel(%arg0: i32, %arg1: i32, %arg2: memref<128x16xf32, #tpu.memory_space<vmem>>, %arg3: memref<128x16xf32, #tpu.memory_space<vmem>>, %arg4: memref<128x128xbf16, #tpu.memory_space<vmem>>, %arg5: memref<128x128xbf16, #tpu.memory_space<vmem>>, %arg6: memref<16x32xbf16, #tpu.memory_space<vmem>>, %arg7: memref<16x32xbf16, #tpu.memory_space<vmem>>, %arg8: memref<1x1x1xf32, #tpu.memory_space<vmem>>, %arg9: memref<1x1x1xf32, #tpu.memory_space<vmem>>) attributes {dimension_semantics = [#tpu.dimension_semantics<parallel>, #tpu.dimension_semantics<arbitrary>], iteration_bounds = array<i64: 1, 1>, scalar_prefetch = 0 : i64, scratch_operands = 1 : i64, tpu.core_type = #tpu.core_type<tc>, window_params = [{transform_indices = @transform_0, window_bounds = array<i64: 128, 16>}, {transform_indices = @transform_1, window_bounds = array<i64: 128, 16>}, {pipeline_mode = #tpu.pipeline_mode<synchronous>, transform_indices = @transform_2, window_bounds = array<i64: 128, 128>}, {pipeline_mode = #tpu.pipeline_mode<synchronous>, transform_indices = @transform_3, window_bounds = array<i64: 128, 128>}, {pipeline_mode = #tpu.pipeline_mode<synchronous>, transform_indices = @transform_4, window_bounds = array<i64: 16, 32>}, {pipeline_mode = #tpu.pipeline_mode<synchronous>, transform_indices = @transform_5, window_bounds = array<i64: 16, 32>}, {transform_indices = @transform_6, window_bounds = array<i64: 1, 1, 1>}]} {
    %c0_i32 = arith.constant 0 : i32
    %0 = arith.cmpi eq, %arg1, %c0_i32 : i32
    %1 = arith.extui %0 : i1 to i32
    %c0_i32_0 = arith.constant 0 : i32
    %2 = arith.cmpi ne, %1, %c0_i32_0 : i32
    scf.if %2 {
      %cst_24 = arith.constant 0.000000e+00 : f32
      %30 = vector.broadcast %cst_24 : f32 to vector<1x1x1xf32>
      %c0_25 = arith.constant 0 : index
      %c0_26 = arith.constant 0 : index
      %c0_27 = arith.constant 0 : index
      %31 = vector.load %arg9[%c0_25, %c0_26, %c0_27] : memref<1x1x1xf32, #tpu.memory_space<vmem>>, vector<1x1x1xf32>
      tpu.vector_store %arg9[%c0_25, %c0_26, %c0_27], %30 {strides = array<i32>} : memref<1x1x1xf32, #tpu.memory_space<vmem>>, vector<1x1x1xf32>,
    } else {
    }
    %c0 = arith.constant 0 : index
    %c0_1 = arith.constant 0 : index
    %3 = vector.load %arg2[%c0, %c0_1] : memref<128x16xf32, #tpu.memory_space<vmem>>, vector<128x16xf32>
    %c0_2 = arith.constant 0 : index
    %c0_3 = arith.constant 0 : index
    %4 = vector.load %arg3[%c0_2, %c0_3] : memref<128x16xf32, #tpu.memory_space<vmem>>, vector<128x16xf32>
    %5 = arith.subf %3, %4 : vector<128x16xf32>
    %6 = arith.truncf %5 : vector<128x16xf32> to vector<128x16xbf16>
    %c0_4 = arith.constant 0 : index
    %c0_5 = arith.constant 0 : index
    %7 = vector.load %arg4[%c0_4, %c0_5] : memref<128x128xbf16, #tpu.memory_space<vmem>>, vector<128x128xbf16>
    %cst = arith.constant dense<0.000000e+00> : vector<128x16xf32>
    %8 = tpu.matmul %7, %6, %cst {dimension_numbers = #tpu.dot_dimension_numbers<[1], [0], [0], [1], [0, 0, 1, 1], [], []>} : vector<128x128xbf16>, vector<128x16xbf16>, vector<128x16xf32> -> vector<128x16xf32>
    %c0_6 = arith.constant 0 : index
    %c0_7 = arith.constant 0 : index
    %9 = vector.load %arg5[%c0_6, %c0_7] : memref<128x128xbf16, #tpu.memory_space<vmem>>, vector<128x128xbf16>
    %cst_8 = arith.constant dense<0.000000e+00> : vector<128x16xf32>
    %10 = tpu.matmul %9, %6, %cst_8 {dimension_numbers = #tpu.dot_dimension_numbers<[1], [0], [0], [1], [0, 0, 1, 1], [], []>} : vector<128x128xbf16>, vector<128x16xbf16>, vector<128x16xf32> -> vector<128x16xf32>
    %11 = arith.truncf %8 : vector<128x16xf32> to vector<128x16xbf16>
    %c0_9 = arith.constant 0 : index
    %c0_10 = arith.constant 0 : index
    %12 = vector.load %arg6[%c0_9, %c0_10] : memref<16x32xbf16, #tpu.memory_space<vmem>>, vector<16x32xbf16>
    %cst_11 = arith.constant dense<0.000000e+00> : vector<128x32xf32>
    %13 = tpu.matmul %11, %12, %cst_11 {dimension_numbers = #tpu.dot_dimension_numbers<[1], [0], [0], [1], [0, 0, 1, 1], [], []>} : vector<128x16xbf16>, vector<16x32xbf16>, vector<128x32xf32> -> vector<128x32xf32>
    %14 = arith.truncf %10 : vector<128x16xf32> to vector<128x16xbf16>
    %c0_12 = arith.constant 0 : index
    %c0_13 = arith.constant 0 : index
    %15 = vector.load %arg7[%c0_12, %c0_13] : memref<16x32xbf16, #tpu.memory_space<vmem>>, vector<16x32xbf16>
    %cst_14 = arith.constant dense<0.000000e+00> : vector<128x32xf32>
    %16 = tpu.matmul %14, %15, %cst_14 {dimension_numbers = #tpu.dot_dimension_numbers<[1], [0], [0], [1], [0, 0, 1, 1], [], []>} : vector<128x16xbf16>, vector<16x32xbf16>, vector<128x32xf32> -> vector<128x32xf32>
    %17 = arith.addf %13, %16 : vector<128x32xf32>
    %c0_15 = arith.constant 0 : index
    %c0_16 = arith.constant 0 : index
    %c0_17 = arith.constant 0 : index
    %18 = vector.load %arg9[%c0_15, %c0_16, %c0_17] : memref<1x1x1xf32, #tpu.memory_space<vmem>>, vector<1x1x1xf32>
    %19 = math.absf %17 : vector<128x32xf32>
    %20 = vector.shape_cast %19 : vector<128x32xf32> to vector<1x128x32xf32>
    %cst_18 = arith.constant dense<0.000000e+00> : vector<1xf32>
    %21 = vector.multi_reduction <add>, %20, %cst_18 [1, 2] : vector<1x128x32xf32> to vector<1xf32>
    %22 = vector.shape_cast %21 : vector<1xf32> to vector<1x1x1xf32>
    %23 = vector.extract %22[0, 0, 0] : f32 from vector<1x1x1xf32>
    %24 = vector.broadcast %23 : f32 to vector<1x1x1xf32>
    %25 = arith.addf %18, %24 : vector<1x1x1xf32>
    %c0_19 = arith.constant 0 : index
    %c0_20 = arith.constant 0 : index
    %c0_21 = arith.constant 0 : index
    %26 = vector.load %arg9[%c0_19, %c0_20, %c0_21] : memref<1x1x1xf32, #tpu.memory_space<vmem>>, vector<1x1x1xf32>
    tpu.vector_store %arg9[%c0_19, %c0_20, %c0_21], %25 {strides = array<i32>} : memref<1x1x1xf32, #tpu.memory_space<vmem>>, vector<1x1x1xf32>,
    %c0_i32_22 = arith.constant 0 : i32
    %27 = arith.cmpi eq, %arg1, %c0_i32_22 : i32
    %28 = arith.extui %27 : i1 to i32
    %c0_i32_23 = arith.constant 0 : i32
    %29 = arith.cmpi ne, %28, %c0_i32_23 : i32
    scf.if %29 {
      %c0_24 = arith.constant 0 : index
      %c0_25 = arith.constant 0 : index
      %c0_26 = arith.constant 0 : index
      %30 = vector.load %arg9[%c0_24, %c0_25, %c0_26] : memref<1x1x1xf32, #tpu.memory_space<vmem>>, vector<1x1x1xf32>
      %c0_27 = arith.constant 0 : index
      %c0_28 = arith.constant 0 : index
      %c0_29 = arith.constant 0 : index
      %31 = vector.load %arg8[%c0_27, %c0_28, %c0_29] : memref<1x1x1xf32, #tpu.memory_space<vmem>>, vector<1x1x1xf32>
      tpu.vector_store %arg8[%c0_27, %c0_28, %c0_29], %30 {strides = array<i32>} : memref<1x1x1xf32, #tpu.memory_space<vmem>>, vector<1x1x1xf32>,
    } else {
    }
    return
  }
  func.func @transform_0(%arg0: i32, %arg1: i32) -> (i32, i32) {
    %c1_i32 = arith.constant 1 : i32
    %0 = arith.muli %arg0, %c1_i32 : i32
    %1 = arith.addi %0, %arg1 : i32
    %c0_i32 = arith.constant 0 : i32
    %c0_i32_0 = arith.constant 0 : i32
    return %1, %c0_i32 : i32, i32
  }
  func.func @transform_1(%arg0: i32, %arg1: i32) -> (i32, i32) {
    %c1_i32 = arith.constant 1 : i32
    %0 = arith.muli %arg0, %c1_i32 : i32
    %1 = arith.addi %0, %arg1 : i32
    %c0_i32 = arith.constant 0 : i32
    %c0_i32_0 = arith.constant 0 : i32
    return %1, %c0_i32 : i32, i32
  }
  func.func @transform_2(%arg0: i32, %arg1: i32) -> (i32, i32) {
    %c0_i32 = arith.constant 0 : i32
    %c0_i32_0 = arith.constant 0 : i32
    %c0_i32_1 = arith.constant 0 : i32
    return %c0_i32, %c0_i32_0 : i32, i32
  }
  func.func @transform_3(%arg0: i32, %arg1: i32) -> (i32, i32) {
    %c0_i32 = arith.constant 0 : i32
    %c0_i32_0 = arith.constant 0 : i32
    %c0_i32_1 = arith.constant 0 : i32
    return %c0_i32, %c0_i32_0 : i32, i32
  }
  func.func @transform_4(%arg0: i32, %arg1: i32) -> (i32, i32) {
    %c0_i32 = arith.constant 0 : i32
    %c0_i32_0 = arith.constant 0 : i32
    %c0_i32_1 = arith.constant 0 : i32
    return %c0_i32, %c0_i32_0 : i32, i32
  }
  func.func @transform_5(%arg0: i32, %arg1: i32) -> (i32, i32) {
    %c0_i32 = arith.constant 0 : i32
    %c0_i32_0 = arith.constant 0 : i32
    %c0_i32_1 = arith.constant 0 : i32
    return %c0_i32, %c0_i32_0 : i32, i32
  }
  func.func @transform_6(%arg0: i32, %arg1: i32) -> (i32, i32, i32) {
    %c0_i32 = arith.constant 0 : i32
    %c0_i32_0 = arith.constant 0 : i32
    %c0_i32_1 = arith.constant 0 : i32
    return %arg0, %c0_i32, %c0_i32_0 : i32, i32, i32
  }
}

</mosaic_0001>

<bundles_post_ra>
// kernel: tpu_custom_call.1
= control target key start
LH: loop header
LB: loop body
LE: loop exit
PB: predicated region body
PF: predicated region fallthrough
CT: control target
= control target key end

     0   :  { %s1274_s0 = inlined_call_operand.vmem [shape: f32[128,16], index: 0, kind: input, shape index: {}]   ;;  %s1275_s1 = inlined_call_operand.vmem [shape: f32[128,16], index: 1, kind: input, shape index: {}]   ;;  %s1276_s2 = inlined_call_operand.vmem [shape: bf16[128,128], index: 2, kind: input, shape index: {}]   ;;  %s1277_s3 = inlined_call_operand.vmem [shape: bf16[128,128], index: 3, kind: input, shape index: {}]   ;;  %s1278_s4 = inlined_call_operand.vmem [shape: bf16[16,32], index: 4, kind: input, shape index: {}]   ;;  %s1279_s5 = inlined_call_operand.vmem [shape: bf16[16,32], index: 5, kind: input, shape index: {}]   ;;  %s1280_s6 = inlined_call_operand.hbm [shape: f32[1,1,1], index: 6, kind: output, shape index: {}]  }
   0x1   :  { %v89_v0 = vld [vmem:[%s1274_s0 + $0x70] sm:$0xff]  ;;  %v90_v1 = vld [vmem:[%s1274_s0 + $0x78] sm:$0xff]  ;;  %v87_v5 = vld [vmem:[%s1274_s0 + $0x60] sm:$0xff] }
   0x2   :  { %v105_v2 = vld [vmem:[%s1275_s1 + $0x70] sm:$0xff]  ;;  %v106_v3 = vld [vmem:[%s1275_s1 + $0x78] sm:$0xff]  ;;  %v88_v6 = vld [vmem:[%s1274_s0 + $0x68] sm:$0xff] }
   0x3   :  { %v121_v4 = vsub.f32 %v89_v0, %v105_v2  ;;  %v122_v7 = vsub.f32 %v90_v1, %v106_v3  ;;  %v103_v8 = vld [vmem:[%s1275_s1 + $0x60] sm:$0xff]  ;;  %v104_v9 = vld [vmem:[%s1275_s1 + $0x68] sm:$0xff]  ;;  %v85_v10 = vld [vmem:[%s1274_s0 + $0x50] sm:$0xff] }
   0x4   :  { %v119_v11 = vsub.f32 %v87_v5, %v103_v8  ;;  %v120_v12 = vsub.f32 %v88_v6, %v104_v9  ;;  %v86_v13 = vld [vmem:[%s1274_s0 + $0x58] sm:$0xff]  ;;  %v101_v14 = vld [vmem:[%s1275_s1 + $0x50] sm:$0xff]  ;;  %v83_v19 = vld [vmem:[%s1274_s0 + $0x40] sm:$0xff] }
   0x5   :  { %v102_v15 = vld [vmem:[%s1275_s1 + $0x58] sm:$0xff]  ;;  %v130_v16 = vpack.c.bf16 %v122_v7, %v121_v4  ;;  %v117_v17 = vsub.f32 %v85_v10, %v101_v14  ;;  %v84_v21 = vld [vmem:[%s1274_s0 + $0x48] sm:$0xff]  ;;  %v99_v22 = vld [vmem:[%s1275_s1 + $0x40] sm:$0xff] }
   0x6   :  { %v118_v18 = vsub.f32 %v86_v13, %v102_v15  ;;  %v129_v20 = vpack.c.bf16 %v120_v12, %v119_v11  ;;  %v100_v23 = vld [vmem:[%s1275_s1 + $0x48] sm:$0xff]  ;;  %v115_v25 = vsub.f32 %v83_v19, %v99_v22  ;;  %v81_v27 = vld [vmem:[%s1274_s0 + $0x30] sm:$0xff]  ;;  %v82_v28 = vld [vmem:[%s1274_s0 + $0x38] sm:$0xff] }
   0x7   :  { %905 = vmatprep.subr.bf16.mxu0 %v130_v16  ;;  %937 = vmatprep.subr.bf16.mxu1 %v130_v16  ;;  %v116_v26 = vsub.f32 %v84_v21, %v100_v23  ;;  %v97_v29 = vld [vmem:[%s1275_s1 + $0x30] sm:$0xff]  ;;  %v98_v30 = vld [vmem:[%s1275_s1 + $0x38] sm:$0xff]  ;;  %v79_v31 = vld [vmem:[%s1274_s0 + $0x20] sm:$0xff] }
   0x8   :  { %906 = vmatpush3.bf16.msra.mxu0 %v130_v16  ;;  %938 = vmatpush3.bf16.msra.mxu1 %v130_v16  ;;  %v128_v24 = vpack.c.bf16 %v118_v18, %v117_v17  ;;  %v80_v32 = vld [vmem:[%s1274_s0 + $0x28] sm:$0xff]  ;;  %v95_v33 = vld [vmem:[%s1275_s1 + $0x20] sm:$0xff]  ;;  %v113_v36 = vsub.f32 %v81_v27, %v97_v29  ;;  %v114_v37 = vsub.f32 %v82_v28, %v98_v30  ;;  %v77_v40 = vld [vmem:[%s1274_s0 + $0x10] sm:$0xff] }
   0x9   :  { %907 = vmatprep.subr.bf16.mxu0 %v129_v20  ;;  %939 = vmatprep.subr.bf16.mxu1 %v129_v20  ;;  %v1009_v34 = vld [vmem:[%s1276_s2] sm:$0xff]   ;;  %v127_v35 = vpack.c.bf16 %v116_v26, %v115_v25  ;;  %v96_v39 = vld [vmem:[%s1275_s1 + $0x28] sm:$0xff]  ;;  %v78_v41 = vld [vmem:[%s1274_s0 + $0x18] sm:$0xff]  ;;  %v111_v43 = vsub.f32 %v79_v31, %v95_v33 }
   0xa   :  { %v1010_v38 = vld [vmem:[%s1277_s3] sm:$0xff]   ;;  %921 = vmatprep.mubr.bf16.mxu0 %v1009_v34  ;;  %v126_v42 = vpack.c.bf16 %v114_v37, %v113_v36  ;;  %v112_v44 = vsub.f32 %v80_v32, %v96_v39  ;;  %v93_v45 = vld [vmem:[%s1275_s1 + $0x10] sm:$0xff]  ;;  %v94_v46 = vld [vmem:[%s1275_s1 + $0x18] sm:$0xff] }
   0xb   :  { %953 = vmatprep.mubr.bf16.mxu1 %v1010_v38  ;;  %v75_v47 = vld [vmem:[%s1274_s0] sm:$0xff]  ;;  %v76_v48 = vld [vmem:[%s1274_s0 + $0x8] sm:$0xff]  ;;  %v109_v50 = vsub.f32 %v77_v40, %v93_v45  ;;  %v110_v51 = vsub.f32 %v78_v41, %v94_v46 }
   0xc   :  { %908 = vmatpush3.bf16.msra.mxu0 %v129_v20  ;;  %940 = vmatpush3.bf16.msra.mxu1 %v129_v20  ;;  %v125_v49 = vpack.c.bf16 %v112_v44, %v111_v43  ;;  %v91_v52 = vld [vmem:[%s1275_s1] sm:$0xff]  ;;  %v92_v53 = vld [vmem:[%s1275_s1 + $0x8] sm:$0xff] }
   0xd   :  { %909 = vmatprep.subr.bf16.mxu0 %v128_v24  ;;  %941 = vmatprep.subr.bf16.mxu1 %v128_v24  ;;  %v124_v54 = vpack.c.bf16 %v110_v51, %v109_v50  ;;  %v107_v55 = vsub.f32 %v75_v47, %v91_v52  ;;  %v108_v56 = vsub.f32 %v76_v48, %v92_v53 }
   0xf   :  { %v123_v57 = vpack.c.bf16 %v108_v56, %v107_v55 }
  0x10   :  { %910 = vmatpush3.bf16.msra.mxu0 %v128_v24  ;;  %942 = vmatpush3.bf16.msra.mxu1 %v128_v24 }
  0x11   :  { %911 = vmatprep.subr.bf16.mxu0 %v127_v35  ;;  %943 = vmatprep.subr.bf16.mxu1 %v127_v35 }
  0x14   :  { %912 = vmatpush3.bf16.msra.mxu0 %v127_v35  ;;  %944 = vmatpush3.bf16.msra.mxu1 %v127_v35 }
  0x15   :  { %913 = vmatprep.subr.bf16.mxu0 %v126_v42  ;;  %945 = vmatprep.subr.bf16.mxu1 %v126_v42 }
  0x18   :  { %914 = vmatpush3.bf16.msra.mxu0 %v126_v42  ;;  %946 = vmatpush3.bf16.msra.mxu1 %v126_v42 }
  0x19   :  { %915 = vmatprep.subr.bf16.mxu0 %v125_v49  ;;  %947 = vmatprep.subr.bf16.mxu1 %v125_v49 }
  0x1c   :  { %916 = vmatpush3.bf16.msra.mxu0 %v125_v49  ;;  %948 = vmatpush3.bf16.msra.mxu1 %v125_v49 }
  0x1d   :  { %917 = vmatprep.subr.bf16.mxu0 %v124_v54  ;;  %949 = vmatprep.subr.bf16.mxu1 %v124_v54 }
  0x1e   :  { %11 = vsyncpa [#allocation4], 0  ;;  %v1025_v58 = vld [vmem:[%s1279_s5] sm:$0xff]   ;;  %v1011_v60 = vld [vmem:[%s1276_s2 + $0x8] sm:$0xff]   ;;  %vm479_vm0 = vcmask 130048   ;;  %vm745_vm1 = vcmask 261120  }
  0x1f   :  { %v1026_v59 = vld [vmem:[%s1278_s4] sm:$0xff]   ;;  %v1012_v61 = vld [vmem:[%s1277_s3 + $0x8] sm:$0xff]   ;;  %v1013_v62 = vld [vmem:[%s1276_s2 + $0x10] sm:$0xff]   ;;  %vm73_vm2 = vcmask 0  }
  0x20   :  { %918 = vmatpush3.bf16.msra.mxu0 %v124_v54  ;;  %950 = vmatpush3.bf16.msra.mxu1 %v124_v54  ;;  %v1014_v63 = vld [vmem:[%s1277_s3 + $0x10] sm:$0xff]   ;;  %v1015_v0 = vld [vmem:[%s1276_s2 + $0x18] sm:$0xff]   ;;  %v1017_v2 = vld [vmem:[%s1276_s2 + $0x20] sm:$0xff]  }
  0x21   :  { %919 = vmatprep.subr.bf16.mxu0 %v123_v57  ;;  %951 = vmatprep.subr.bf16.mxu1 %v123_v57  ;;  %v1016_v1 = vld [vmem:[%s1277_s3 + $0x18] sm:$0xff]   ;;  %v1018_v3 = vld [vmem:[%s1277_s3 + $0x20] sm:$0xff]   ;;  %v1019_v4 = vld [vmem:[%s1276_s2 + $0x28] sm:$0xff]  }
  0x22   :  { %v1020_v5 = vld [vmem:[%s1277_s3 + $0x28] sm:$0xff]   ;;  %v1021_v6 = vld [vmem:[%s1276_s2 + $0x30] sm:$0xff]   ;;  %v1023_v8 = vld [vmem:[%s1276_s2 + $0x38] sm:$0xff]  }
  0x23   :  { %v1022_v7 = vld [vmem:[%s1277_s3 + $0x30] sm:$0xff]   ;;  %v1024_v9 = vld [vmem:[%s1277_s3 + $0x38] sm:$0xff]   ;;  %s1050_s3 = smov [#allocation3]  }
  0x24   :  { %920 = vmatpush3.bf16.msra.mxu0 %v123_v57  ;;  %952 = vmatpush3.bf16.msra.mxu1 %v123_v57  ;;  %s801_s19 = sshll.u32 %s1050_s3, 4  ;;  %s802_s19 = int_to_ptr.vmem [resolvable:$true] %s801_s19 }
  0x25   :  { %969 = vmatprep.subr.bf16.mxu0 %v1025_v58  ;;  %987 = vmatprep.subr.bf16.mxu1 %v1026_v59  ;;  %s1027_s20 = scalar_lea.vmem %s802_s19, 16  ;;  %s1031_s21 = scalar_lea.vmem %s802_s19, 32 }
  0x26   :  { %p1028_p0 = scmp.ne.s32.totalorder %s802_s19, %s1027_s20  ;;  %p1032_p1 = scmp.lt.s32.totalorder %s802_s19, %s802_s19 }
  0x27   :  { %922 = vmatmul.mubr.bf16.vlgmr.msra.gmra.mxu0 %v1011_v60  ;;  %954 = vmatmul.mubr.bf16.vlgmr.msra.gmra.mxu1 %v1012_v61  ;;  %p1033_p2 = scmp.lt.s32.totalorder %s1031_s21, %s1027_s20 }
  0x28   :  { %925 = vmatprep.mubr.bf16.mxu0 %v1013_v62  ;;  %957 = vmatprep.mubr.bf16.mxu1 %v1014_v63 }
  0x29   :  { %970 = vmatpush3.bf16.msra.mxu0 %v1025_v58  ;;  %988 = vmatpush3.bf16.msra.mxu1 %v1026_v59  ;;  %p1034_p3 = por %p1033_p2, %p1032_p1 }
  0x2b   :  { %p1035_p4 = pnand %p1034_p3, %p1028_p0 }
  0x2f   :  { %926 = vmatmul.mubr.bf16.gmra.mxu0 %v1015_v0  ;;  %958 = vmatmul.mubr.bf16.gmra.mxu1 %v1016_v1 }
  0x30   :  { %929 = vmatprep.mubr.bf16.mxu0 %v1017_v2  ;;  %961 = vmatprep.mubr.bf16.mxu1 %v1018_v3 }
  0x37   :  { %930 = vmatmul.mubr.bf16.gmra.mxu0 %v1019_v4  ;;  %962 = vmatmul.mubr.bf16.gmra.mxu1 %v1020_v5 }
  0x38   :  { %933 = vmatprep.mubr.bf16.mxu0 %v1021_v6  ;;  %965 = vmatprep.mubr.bf16.mxu1 %v1022_v7 }
  0x3f   :  { %934 = vmatmul.mubr.bf16.gmra.mxu0 %v1023_v8  ;;  %966 = vmatmul.mubr.bf16.gmra.mxu1 %v1024_v9 }
  0xe7   :  { %v923_v10 = vpop.f32.mrf.mxu0  ;;  %v955_v11 = vpop.f32.mrf.mxu1 }
  0xe9   :  { %v229_v12 = vpop.f32.mrf.mxu0  ;;  %v390_v13 = vpop.f32.mrf.mxu1 }
  0xeb   :  { %v924_v14 = vpop.f32.mrf.mxu0  ;;  %v956_v15 = vpop.f32.mrf.mxu1 }
  0xec   :  { %v454_v20 = vpack.c.bf16 %v924_v14, %v923_v10  ;;  %v464_v21 = vpack.c.bf16 %v956_v15, %v955_v11 }
  0xed   :  { %v232_v16 = vpop.f32.mrf.mxu0  ;;  %v393_v17 = vpop.f32.mrf.mxu1 }
  0xee   :  { %v453_v18 = vpack.c.bf16 %v232_v16, %v229_v12  ;;  %v463_v19 = vpack.c.bf16 %v393_v17, %v390_v13 }
  0xef   :  { %v927_v22 = vpop.f32.mrf.mxu0  ;;  %v959_v23 = vpop.f32.mrf.mxu1 }
  0xf0   :  { %971 = vmatprep.mubr.msk.bf16.mxu0 %vm479_vm0, %v463_v19  ;;  %989 = vmatprep.mubr.msk.bf16.mxu1 %vm479_vm0, %v453_v18 }
  0xf1   :  { %v245_v24 = vpop.f32.mrf.mxu0  ;;  %v406_v25 = vpop.f32.mrf.mxu1  ;;  %972 = vmatmul.mubr.msk.bf16.vlgmr.msra.gmra.mxu0 %vm479_vm0, %v464_v21  ;;  %990 = vmatmul.mubr.msk.bf16.vlgmr.msra.gmra.mxu1 %vm479_vm0, %v454_v20 }
  0xf3   :  { %v928_v26 = vpop.f32.mrf.mxu0  ;;  %v960_v27 = vpop.f32.mrf.mxu1 }
  0xf4   :  { %v456_v32 = vpack.c.bf16 %v928_v26, %v927_v22  ;;  %v466_v33 = vpack.c.bf16 %v960_v27, %v959_v23 }
  0xf5   :  { %v248_v28 = vpop.f32.mrf.mxu0  ;;  %v409_v29 = vpop.f32.mrf.mxu1 }
  0xf6   :  { %v455_v30 = vpack.c.bf16 %v248_v28, %v245_v24  ;;  %v465_v31 = vpack.c.bf16 %v409_v29, %v406_v25 }
  0xf7   :  { %v931_v34 = vpop.f32.mrf.mxu0  ;;  %v963_v35 = vpop.f32.mrf.mxu1 }
  0xf8   :  { %975 = vmatprep.mubr.msk.bf16.mxu0 %vm479_vm0, %v465_v31  ;;  %993 = vmatprep.mubr.msk.bf16.mxu1 %vm479_vm0, %v455_v30 }
  0xf9   :  { %v261_v36 = vpop.f32.mrf.mxu0  ;;  %v422_v37 = vpop.f32.mrf.mxu1  ;;  %976 = vmatmul.mubr.msk.bf16.gmra.mxu0 %vm479_vm0, %v466_v33  ;;  %994 = vmatmul.mubr.msk.bf16.gmra.mxu1 %vm479_vm0, %v456_v32 }
  0xfb   :  { %v932_v38 = vpop.f32.mrf.mxu0  ;;  %v964_v39 = vpop.f32.mrf.mxu1 }
  0xfc   :  { %v458_v44 = vpack.c.bf16 %v932_v38, %v931_v34  ;;  %v468_v45 = vpack.c.bf16 %v964_v39, %v963_v35 }
  0xfd   :  { %v264_v40 = vpop.f32.mrf.mxu0  ;;  %v425_v41 = vpop.f32.mrf.mxu1 }
  0xfe   :  { %v457_v42 = vpack.c.bf16 %v264_v40, %v261_v36  ;;  %v467_v43 = vpack.c.bf16 %v425_v41, %v422_v37 }
  0xff   :  { %v935_v46 = vpop.f32.mrf.mxu0  ;;  %v967_v47 = vpop.f32.mrf.mxu1 }
 0x100   :  { %979 = vmatprep.mubr.msk.bf16.mxu0 %vm479_vm0, %v467_v43  ;;  %997 = vmatprep.mubr.msk.bf16.mxu1 %vm479_vm0, %v457_v42 }
 0x101   :  { %v277_v48 = vpop.f32.mrf.mxu0  ;;  %v438_v49 = vpop.f32.mrf.mxu1  ;;  %980 = vmatmul.mubr.msk.bf16.gmra.mxu0 %vm479_vm0, %v468_v45  ;;  %998 = vmatmul.mubr.msk.bf16.gmra.mxu1 %vm479_vm0, %v458_v44 }
 0x103   :  { %v936_v50 = vpop.f32.mrf.mxu0  ;;  %v968_v51 = vpop.f32.mrf.mxu1 }
 0x104   :  { %v460_v56 = vpack.c.bf16 %v936_v50, %v935_v46  ;;  %v470_v57 = vpack.c.bf16 %v968_v51, %v967_v47 }
 0x105   :  { %v280_v52 = vpop.f32.mrf.mxu0  ;;  %v441_v53 = vpop.f32.mrf.mxu1 }
 0x106   :  { %v459_v54 = vpack.c.bf16 %v280_v52, %v277_v48  ;;  %v469_v55 = vpack.c.bf16 %v441_v53, %v438_v49 }
 0x108   :  { %983 = vmatprep.mubr.msk.bf16.mxu0 %vm479_vm0, %v469_v55  ;;  %1001 = vmatprep.mubr.msk.bf16.mxu1 %vm479_vm0, %v459_v54 }
 0x109   :  { %984 = vmatmul.mubr.msk.bf16.gmra.mxu0 %vm479_vm0, %v470_v57  ;;  %1002 = vmatmul.mubr.msk.bf16.gmra.mxu1 %vm479_vm0, %v460_v56 }
 0x1b1   :  { %v973_v58 = vpop.f32.mrf.mxu0  ;;  %v991_v59 = vpop.f32.mrf.mxu1 }
 0x1b2   :  { %v674_v1 = vadd.f32 %v991_v59, %v973_v58 }
 0x1b3   :  { %v538_v60 = vpop.f32.mrf.mxu0  ;;  %v665_v61 = vpop.f32.mrf.mxu1 }
 0x1b4   :  { %v666_v62 = vadd.f32 %v665_v61, %v538_v60  ;;  %v731_v9 = vand.u32 2147483647, %v674_v1 }
 0x1b5   :  { %v974_v63 = vpop.f32.mrf.mxu0  ;;  %v992_v0 = vpop.f32.mrf.mxu1 }
 0x1b6   :  { %v729_v4 = vand.u32 2147483647, %v666_v62  ;;  %v677_v5 = vadd.f32 %v992_v0, %v974_v63  ;;  %v749_v20 = vsel %vm745_vm1, %v731_v9, 0.0 }
 0x1b7   :  { %v541_v2 = vpop.f32.mrf.mxu0  ;;  %v668_v3 = vpop.f32.mrf.mxu1 }
 0x1b8   :  { %v669_v6 = vadd.f32 %v668_v3, %v541_v2  ;;  %v746_v13 = vsel %vm745_vm1, %v729_v4, 0.0  ;;  %v732_v14 = vand.u32 2147483647, %v677_v5 }
 0x1b9   :  { %v977_v7 = vpop.f32.mrf.mxu0  ;;  %v995_v8 = vpop.f32.mrf.mxu1 }
 0x1ba   :  { %v730_v10 = vand.u32 2147483647, %v669_v6  ;;  %v690_v21 = vadd.f32 %v995_v8, %v977_v7  ;;  %v751_v26 = vsel %vm745_vm1, %v732_v14, 0.0 }
 0x1bb   :  { %v554_v11 = vpop.f32.mrf.mxu0  ;;  %v681_v12 = vpop.f32.mrf.mxu1 }
 0x1bc   :  { %v747_v15 = vsel %vm745_vm1, %v730_v10, 0.0  ;;  %v682_v16 = vadd.f32 %v681_v12, %v554_v11  ;;  %v735_v32 = vand.u32 2147483647, %v690_v21 }
 0x1bd   :  { %v748_v17 = vadd.f32 %v747_v15, %v746_v13  ;;  %v978_v18 = vpop.f32.mrf.mxu0  ;;  %v996_v19 = vpop.f32.mrf.mxu1 }
 0x1be   :  { %v733_v22 = vand.u32 2147483647, %v682_v16  ;;  %v693_v27 = vadd.f32 %v996_v19, %v978_v18  ;;  %v757_v44 = vsel %vm745_vm1, %v735_v32, 0.0 }
 0x1bf   :  { %v750_v23 = vadd.f32 %v749_v20, %v748_v17  ;;  %v557_v24 = vpop.f32.mrf.mxu0  ;;  %v684_v25 = vpop.f32.mrf.mxu1 }
 0x1c0   :  { %v685_v28 = vadd.f32 %v684_v25, %v557_v24  ;;  %v753_v33 = vsel %vm745_vm1, %v733_v22, 0.0  ;;  %v736_v38 = vand.u32 2147483647, %v693_v27  ;;  %v1049_v25 = vmov 0.0  }
 0x1c1   :  { %v752_v29 = vadd.f32 %v751_v26, %v750_v23  ;;  %v981_v30 = vpop.f32.mrf.mxu0  ;;  %v999_v31 = vpop.f32.mrf.mxu1  ;;  %74 = vst.msk [vmem:[#allocation2] sm:$0x1] %vm73_vm2, %v1049_v25 }
 0x1c2   :  { %v734_v34 = vand.u32 2147483647, %v685_v28  ;;  %v706_v45 = vadd.f32 %v999_v31, %v981_v30  ;;  %v759_v50 = vsel %vm745_vm1, %v736_v38, 0.0 }
 0x1c3   :  { %v754_v35 = vadd.f32 %v753_v33, %v752_v29  ;;  %v570_v36 = vpop.f32.mrf.mxu0  ;;  %v697_v37 = vpop.f32.mrf.mxu1 }
 0x1c4   :  { %v755_v39 = vsel %vm745_vm1, %v734_v34, 0.0  ;;  %v698_v40 = vadd.f32 %v697_v37, %v570_v36  ;;  %v739_v56 = vand.u32 2147483647, %v706_v45 }
 0x1c5   :  { %v756_v41 = vadd.f32 %v755_v39, %v754_v35  ;;  %v982_v42 = vpop.f32.mrf.mxu0  ;;  %v1000_v43 = vpop.f32.mrf.mxu1 }
 0x1c6   :  { %v737_v46 = vand.u32 2147483647, %v698_v40  ;;  %v709_v51 = vadd.f32 %v1000_v43, %v982_v42  ;;  %v765_v4 = vsel %vm745_vm1, %v739_v56, 0.0 }
 0x1c7   :  { %v758_v47 = vadd.f32 %v757_v44, %v756_v41  ;;  %v573_v48 = vpop.f32.mrf.mxu0  ;;  %v700_v49 = vpop.f32.mrf.mxu1 }
 0x1c8   :  { %v701_v52 = vadd.f32 %v700_v49, %v573_v48  ;;  %v761_v57 = vsel %vm745_vm1, %v737_v46, 0.0  ;;  %v740_v62 = vand.u32 2147483647, %v709_v51  ;;  %v728_v33 = vld [vmem:[#allocation2] sm:$0x1] }
 0x1c9   :  { %v760_v53 = vadd.f32 %v759_v50, %v758_v47  ;;  %v985_v54 = vpop.f32.mrf.mxu0  ;;  %v1003_v55 = vpop.f32.mrf.mxu1 }
 0x1ca   :  { %v738_v58 = vand.u32 2147483647, %v701_v52  ;;  %v722_v5 = vadd.f32 %v1003_v55, %v985_v54  ;;  %v767_v10 = vsel %vm745_vm1, %v740_v62, 0.0 }
 0x1cb   :  { %v762_v59 = vadd.f32 %v761_v57, %v760_v53  ;;  %v586_v60 = vpop.f32.mrf.mxu0  ;;  %v713_v61 = vpop.f32.mrf.mxu1 }
 0x1cc   :  { %v763_v63 = vsel %vm745_vm1, %v738_v58, 0.0  ;;  %v714_v0 = vadd.f32 %v713_v61, %v586_v60  ;;  %v743_v14 = vand.u32 2147483647, %v722_v5 }
 0x1cd   :  { %v764_v1 = vadd.f32 %v763_v63, %v762_v59  ;;  %v986_v2 = vpop.f32.mrf.mxu0  ;;  %v1004_v3 = vpop.f32.mrf.mxu1 }
 0x1ce   :  { %v741_v6 = vand.u32 2147483647, %v714_v0  ;;  %v725_v11 = vadd.f32 %v1004_v3, %v986_v2  ;;  %v773_v21 = vsel %vm745_vm1, %v743_v14, 0.0 }
 0x1cf   :  { %v766_v7 = vadd.f32 %v765_v4, %v764_v1  ;;  %v589_v8 = vpop.f32.mrf.mxu0  ;;  %v716_v9 = vpop.f32.mrf.mxu1 }
 0x1d0   :  { %v717_v12 = vadd.f32 %v716_v9, %v589_v8  ;;  %v769_v15 = vsel %vm745_vm1, %v741_v6, 0.0  ;;  %v744_v18 = vand.u32 2147483647, %v725_v11 }
 0x1d1   :  { %v768_v13 = vadd.f32 %v767_v10, %v766_v7 }
 0x1d2   :  { %v742_v16 = vand.u32 2147483647, %v717_v12  ;;  %v775_v23 = vsel %vm745_vm1, %v744_v18, 0.0 }
 0x1d3   :  { %v770_v17 = vadd.f32 %v769_v15, %v768_v13 }
 0x1d4   :  { %v771_v19 = vsel %vm745_vm1, %v742_v16, 0.0 }
 0x1d5   :  { %v772_v20 = vadd.f32 %v771_v19, %v770_v17 }
 0x1d7   :  { %v774_v22 = vadd.f32 %v773_v21, %v772_v20 }
 0x1d9   :  { %v776_v24 = vadd.f32 %v775_v23, %v774_v22 }
 0x1db   :  { %777 = vadd.xlane.f32.xlu0 %v776_v24 }
 0x264   :  { %v778_v26 = vpop.xlane.xlu0 %777 }
 0x265   :  { %v779_v27 = vrot.slane %v778_v26, 4 }
 0x267   :  { %v780_v28 = vadd.f32 %v779_v27, %v778_v26 }
 0x269   :  { %v781_v29 = vrot.slane %v780_v28, 2 }
 0x26b   :  { %v782_v30 = vadd.f32 %v781_v29, %v780_v28 }
 0x26d   :  { %v783_v31 = vrot.slane %v782_v30, 1 }
 0x26f   :  { %v784_v32 = vadd.f32 %v783_v31, %v782_v30 }
 0x271   :  { %1005 = vpush %v784_v32 }
 0x2a2   :  { %s1006_s2 = spop %1005 }
 0x2a3   :  { %v786_v34 = vstv %s1006_s2 }
 0x2a4   :  { %v787_v35 = vadd.f32 %v786_v34, %v728_v33 }
 0x2a6   :  { %789 = vst.msk [vmem:[#allocation2] sm:$0x1] %vm73_vm2, %v787_v35 }
 0x2ad   :  { %v793_v36 = vld [vmem:[#allocation2] sm:$0x1] }
 0x2ae   :  { %794 = vst.msk [vmem:[#allocation3] sm:$0x1] %vm73_vm2, %v793_v36 }
 0x2af   :  { %1038 = shalt.err (!%p1035_p4)
}
 0x2b0   :  { %804 = dma.vmem_to_hbm [thread:$0]  %s802_s19, 16, %s1280_s6, [#allocation4]  }
 0x2b1   :  { %1047 = dma.done.wait [#allocation4], 16  }
 0x2b2   :  { %1048 = vsyncadd [#allocation4], 4294967280 }
 0x2b3   :  { %808 = vsyncpa [#allocation4], 1 }

</bundles_post_ra>
